<compile_context>
chip_gen: v5e
topology: v5e:2x2
jax: 0.10.0
libtpu: 0.0.40
codegen_flags: <defaults>
</compile_context>

<pallas_src>
import functools

import jax
import jax.numpy as jnp
from jax.experimental import pallas as pl
from jax.experimental.pallas import tpu as pltpu


def _mlp_kernel(x_ref, p_ref, o_ref, *, hidden):
    # x_ref: (F, N) f32 in VMEM   (batch on lanes)
    # p_ref: (P,)   f32 in SMEM   flat params: [w1(h*f) | b1(h) | w2(o*h) | b2(o)]
    # o_ref: (O, N) f32 in VMEM   (lane-dense output)
    f, n = x_ref.shape
    o = o_ref.shape[0]
    h = hidden

    # Flat static offsets into the single SMEM parameter array.
    w1_off = 0
    b1_off = w1_off + h * f
    w2_off = b1_off + h
    b2_off = w2_off + o * h

    # One vld of the whole (F, N) tile; rows sliced statically from the value.
    xt = x_ref[...]
    x_rows = [xt[k:k + 1, :] for k in range(f)]

    # Hidden layer: h_j = relu(b1[j] + sum_k w1[j,k] * x[k, :])  — pure VPU work.
    # Bias folded into the first MAC (scalar broadcasts fuse into the vector add).
    h_rows = []
    for j in range(h):
        acc = p_ref[b1_off + j] + p_ref[w1_off + j * f] * x_rows[0]
        for k in range(1, f):
            acc = acc + p_ref[w1_off + j * f + k] * x_rows[k]
        h_rows.append(jnp.maximum(acc, 0.0))

    # Output layer + sigmoid (EUP), still (O, N) lane-dense, unmasked full-lane store.
    for i in range(o):
        z = p_ref[b2_off + i] + p_ref[w2_off + i * h] * h_rows[0]
        for j in range(1, h):
            z = z + p_ref[w2_off + i * h + j] * h_rows[j]
        o_ref[i:i + 1, :] = jax.nn.sigmoid(z)


@jax.jit
def mlp_forward(x, params_flat, *, hidden=3, out=1):
    # x: (N, F) row-major (PyTorch input layout); params_flat: 1-D f32 of all weights.
    n, f = x.shape
    h, o = hidden, out

    # Unrolled scalar-MAC path is only sane for tiny layers; switch to jnp.dot above this.
    assert f <= 16 and h <= 16 and o <= 16, "use an MXU matmul path for larger layers"

    x_t = x.T  # (F, N): put the batch on the lane axis (fused into the jitted program).

    flops = 2 * (f * h + h * o) * n + (h + o) * n          # MACs + relu/sigmoid adds
    bytes_accessed = (f + o) * 4 * n + 4 * params_flat.shape[0]

    out_t = pl.pallas_call(
        functools.partial(_mlp_kernel, hidden=h),
        out_shape=jax.ShapeDtypeStruct((o, n), jnp.float32),
        in_specs=[
            pl.BlockSpec((f, n), lambda: (0, 0)),                # x_t, single full block
            pl.BlockSpec(memory_space=pltpu.MemorySpace.SMEM),   # flat params (scalars)
        ],
        out_specs=pl.BlockSpec((o, n), lambda: (0, 0)),
        cost_estimate=pl.CostEstimate(
            flops=flops, transcendentals=n, bytes_accessed=bytes_accessed),
    )(x_t, params_flat)

    # Free layout plumbing back to PyTorch's (N, O) shape, inside the same program.
    return out_t.T


def init_params(key, input_features, hidden=3, out=1):
    # PyTorch nn.Linear default init: U(-1/sqrt(fan_in), 1/sqrt(fan_in)),
    # weights stored as (out_features, in_features).
    k1, k2, k3, k4 = jax.random.split(key, 4)
    bound1 = 1.0 / jnp.sqrt(jnp.float32(input_features))
    bound2 = 1.0 / jnp.sqrt(jnp.float32(hidden))
    w1 = jax.random.uniform(k1, (hidden, input_features), jnp.float32,
                            minval=-bound1, maxval=bound1)
    b1 = jax.random.uniform(k2, (hidden,), jnp.float32,
                            minval=-bound1, maxval=bound1)
    w2 = jax.random.uniform(k3, (out, hidden), jnp.float32,
                            minval=-bound2, maxval=bound2)
    b2 = jax.random.uniform(k4, (out,), jnp.float32,
                            minval=-bound2, maxval=bound2)
    return w1, b1, w2, b2


def pack_params(w1, b1, w2, b2):
    # Single flat 1-D f32 array: [w1 row-major | b1 | w2 row-major | b2].
    return jnp.concatenate(
        [w1.reshape(-1), b1.reshape(-1), w2.reshape(-1), b2.reshape(-1)]
    ).astype(jnp.float32)


if __name__ == "__main__":
    # Same feature matrix as the PyTorch script: (10, 5).
    features = jnp.array(
        [[0.1, 0.2, 0.3, 0.4, 0.5],
         [0.5, 0.4, 0.3, 0.2, 0.1],
         [0.2, 0.6, 0.3, 0.9, 0.0],
         [0.7, 0.8, 0.4, 0.1, 0.3],
         [0.9, 0.2, 0.2, 0.2, 0.3],
         [0.3, 0.3, 0.6, 0.8, 0.1],
         [0.9, 0.7, 0.3, 0.5, 0.3],
         [0.1, 0.9, 0.8, 0.4, 0.4],
         [0.6, 0.5, 0.2, 0.7, 0.8],
         [0.3, 0.9, 0.9, 0.6, 0.2]], dtype=jnp.float32)

    key = jax.random.PRNGKey(0)
    w1, b1, w2, b2 = init_params(key, input_features=features.shape[1])
    params_flat = pack_params(w1, b1, w2, b2)

    out = mlp_forward(features, params_flat)
    out = jax.block_until_ready(out)

    # Pure-JAX reference (exact f32 elementwise math, same contraction as the kernel).
    h_ref = jnp.maximum((features[:, None, :] * w1[None, :, :]).sum(-1) + b1, 0.0)
    z_ref = (h_ref[:, None, :] * w2[None, :, :]).sum(-1) + b2
    ref = jax.nn.sigmoid(z_ref)

    assert out.shape == (features.shape[0], 1)
    assert jnp.allclose(out, ref, atol=1e-5), "mismatch vs reference"

    print("KERNEL_OK")
</pallas_src>

<mosaic_0001>
module attributes {stable_mosaic.version = 11 : i64} {
  func.func @_mlp_kernel(%arg0: memref<5x10xf32, #tpu.memory_space<vmem>>, %arg1: memref<22xf32, #tpu.memory_space<smem>>, %arg2: memref<1x10xf32, #tpu.memory_space<vmem>>) attributes {dimension_semantics = [], scalar_prefetch = 0 : i64, scratch_operands = 0 : i64, tpu.core_type = #tpu.core_type<tc>} {
    %c0 = arith.constant 0 : index
    %c0_0 = arith.constant 0 : index
    %0 = vector.load %arg0[%c0, %c0_0] : memref<5x10xf32, #tpu.memory_space<vmem>>, vector<5x10xf32>
    %1 = vector.extract_strided_slice %0 {offsets = [0, 0], sizes = [1, 10], strides = [1, 1]} : vector<5x10xf32> to vector<1x10xf32>
    %2 = vector.extract_strided_slice %0 {offsets = [1, 0], sizes = [1, 10], strides = [1, 1]} : vector<5x10xf32> to vector<1x10xf32>
    %3 = vector.extract_strided_slice %0 {offsets = [2, 0], sizes = [1, 10], strides = [1, 1]} : vector<5x10xf32> to vector<1x10xf32>
    %4 = vector.extract_strided_slice %0 {offsets = [3, 0], sizes = [1, 10], strides = [1, 1]} : vector<5x10xf32> to vector<1x10xf32>
    %5 = vector.extract_strided_slice %0 {offsets = [4, 0], sizes = [1, 10], strides = [1, 1]} : vector<5x10xf32> to vector<1x10xf32>
    %c15 = arith.constant 15 : index
    %6 = memref.load %arg1[%c15] : memref<22xf32, #tpu.memory_space<smem>>
    %c0_1 = arith.constant 0 : index
    %7 = memref.load %arg1[%c0_1] : memref<22xf32, #tpu.memory_space<smem>>
    %8 = vector.broadcast %7 : f32 to vector<1x10xf32>
    %9 = arith.mulf %8, %1 : vector<1x10xf32>
    %10 = vector.broadcast %6 : f32 to vector<1x10xf32>
    %11 = arith.addf %10, %9 : vector<1x10xf32>
    %c1 = arith.constant 1 : index
    %12 = memref.load %arg1[%c1] : memref<22xf32, #tpu.memory_space<smem>>
    %13 = vector.broadcast %12 : f32 to vector<1x10xf32>
    %14 = arith.mulf %13, %2 : vector<1x10xf32>
    %15 = arith.addf %11, %14 : vector<1x10xf32>
    %c2 = arith.constant 2 : index
    %16 = memref.load %arg1[%c2] : memref<22xf32, #tpu.memory_space<smem>>
    %17 = vector.broadcast %16 : f32 to vector<1x10xf32>
    %18 = arith.mulf %17, %3 : vector<1x10xf32>
    %19 = arith.addf %15, %18 : vector<1x10xf32>
    %c3 = arith.constant 3 : index
    %20 = memref.load %arg1[%c3] : memref<22xf32, #tpu.memory_space<smem>>
    %21 = vector.broadcast %20 : f32 to vector<1x10xf32>
    %22 = arith.mulf %21, %4 : vector<1x10xf32>
    %23 = arith.addf %19, %22 : vector<1x10xf32>
    %c4 = arith.constant 4 : index
    %24 = memref.load %arg1[%c4] : memref<22xf32, #tpu.memory_space<smem>>
    %25 = vector.broadcast %24 : f32 to vector<1x10xf32>
    %26 = arith.mulf %25, %5 : vector<1x10xf32>
    %27 = arith.addf %23, %26 : vector<1x10xf32>
    %cst = arith.constant 0.000000e+00 : f32
    %28 = vector.broadcast %cst : f32 to vector<1x10xf32>
    %29 = arith.maximumf %27, %28 : vector<1x10xf32>
    %c16 = arith.constant 16 : index
    %30 = memref.load %arg1[%c16] : memref<22xf32, #tpu.memory_space<smem>>
    %c5 = arith.constant 5 : index
    %31 = memref.load %arg1[%c5] : memref<22xf32, #tpu.memory_space<smem>>
    %32 = vector.broadcast %31 : f32 to vector<1x10xf32>
    %33 = arith.mulf %32, %1 : vector<1x10xf32>
    %34 = vector.broadcast %30 : f32 to vector<1x10xf32>
    %35 = arith.addf %34, %33 : vector<1x10xf32>
    %c6 = arith.constant 6 : index
    %36 = memref.load %arg1[%c6] : memref<22xf32, #tpu.memory_space<smem>>
    %37 = vector.broadcast %36 : f32 to vector<1x10xf32>
    %38 = arith.mulf %37, %2 : vector<1x10xf32>
    %39 = arith.addf %35, %38 : vector<1x10xf32>
    %c7 = arith.constant 7 : index
    %40 = memref.load %arg1[%c7] : memref<22xf32, #tpu.memory_space<smem>>
    %41 = vector.broadcast %40 : f32 to vector<1x10xf32>
    %42 = arith.mulf %41, %3 : vector<1x10xf32>
    %43 = arith.addf %39, %42 : vector<1x10xf32>
    %c8 = arith.constant 8 : index
    %44 = memref.load %arg1[%c8] : memref<22xf32, #tpu.memory_space<smem>>
    %45 = vector.broadcast %44 : f32 to vector<1x10xf32>
    %46 = arith.mulf %45, %4 : vector<1x10xf32>
    %47 = arith.addf %43, %46 : vector<1x10xf32>
    %c9 = arith.constant 9 : index
    %48 = memref.load %arg1[%c9] : memref<22xf32, #tpu.memory_space<smem>>
    %49 = vector.broadcast %48 : f32 to vector<1x10xf32>
    %50 = arith.mulf %49, %5 : vector<1x10xf32>
    %51 = arith.addf %47, %50 : vector<1x10xf32>
    %cst_2 = arith.constant 0.000000e+00 : f32
    %52 = vector.broadcast %cst_2 : f32 to vector<1x10xf32>
    %53 = arith.maximumf %51, %52 : vector<1x10xf32>
    %c17 = arith.constant 17 : index
    %54 = memref.load %arg1[%c17] : memref<22xf32, #tpu.memory_space<smem>>
    %c10 = arith.constant 10 : index
    %55 = memref.load %arg1[%c10] : memref<22xf32, #tpu.memory_space<smem>>
    %56 = vector.broadcast %55 : f32 to vector<1x10xf32>
    %57 = arith.mulf %56, %1 : vector<1x10xf32>
    %58 = vector.broadcast %54 : f32 to vector<1x10xf32>
    %59 = arith.addf %58, %57 : vector<1x10xf32>
    %c11 = arith.constant 11 : index
    %60 = memref.load %arg1[%c11] : memref<22xf32, #tpu.memory_space<smem>>
    %61 = vector.broadcast %60 : f32 to vector<1x10xf32>
    %62 = arith.mulf %61, %2 : vector<1x10xf32>
    %63 = arith.addf %59, %62 : vector<1x10xf32>
    %c12 = arith.constant 12 : index
    %64 = memref.load %arg1[%c12] : memref<22xf32, #tpu.memory_space<smem>>
    %65 = vector.broadcast %64 : f32 to vector<1x10xf32>
    %66 = arith.mulf %65, %3 : vector<1x10xf32>
    %67 = arith.addf %63, %66 : vector<1x10xf32>
    %c13 = arith.constant 13 : index
    %68 = memref.load %arg1[%c13] : memref<22xf32, #tpu.memory_space<smem>>
    %69 = vector.broadcast %68 : f32 to vector<1x10xf32>
    %70 = arith.mulf %69, %4 : vector<1x10xf32>
    %71 = arith.addf %67, %70 : vector<1x10xf32>
    %c14 = arith.constant 14 : index
    %72 = memref.load %arg1[%c14] : memref<22xf32, #tpu.memory_space<smem>>
    %73 = vector.broadcast %72 : f32 to vector<1x10xf32>
    %74 = arith.mulf %73, %5 : vector<1x10xf32>
    %75 = arith.addf %71, %74 : vector<1x10xf32>
    %cst_3 = arith.constant 0.000000e+00 : f32
    %76 = vector.broadcast %cst_3 : f32 to vector<1x10xf32>
    %77 = arith.maximumf %75, %76 : vector<1x10xf32>
    %c21 = arith.constant 21 : index
    %78 = memref.load %arg1[%c21] : memref<22xf32, #tpu.memory_space<smem>>
    %c18 = arith.constant 18 : index
    %79 = memref.load %arg1[%c18] : memref<22xf32, #tpu.memory_space<smem>>
    %80 = vector.broadcast %79 : f32 to vector<1x10xf32>
    %81 = arith.mulf %80, %29 : vector<1x10xf32>
    %82 = vector.broadcast %78 : f32 to vector<1x10xf32>
    %83 = arith.addf %82, %81 : vector<1x10xf32>
    %c19 = arith.constant 19 : index
    %84 = memref.load %arg1[%c19] : memref<22xf32, #tpu.memory_space<smem>>
    %85 = vector.broadcast %84 : f32 to vector<1x10xf32>
    %86 = arith.mulf %85, %53 : vector<1x10xf32>
    %87 = arith.addf %83, %86 : vector<1x10xf32>
    %c20 = arith.constant 20 : index
    %88 = memref.load %arg1[%c20] : memref<22xf32, #tpu.memory_space<smem>>
    %89 = vector.broadcast %88 : f32 to vector<1x10xf32>
    %90 = arith.mulf %89, %77 : vector<1x10xf32>
    %91 = arith.addf %87, %90 : vector<1x10xf32>
    %92 = arith.negf %91 : vector<1x10xf32>
    %93 = math.exp %92 : vector<1x10xf32>
    %cst_4 = arith.constant 1.000000e+00 : f32
    %94 = vector.broadcast %cst_4 : f32 to vector<1x10xf32>
    %95 = arith.addf %94, %93 : vector<1x10xf32>
    %96 = arith.divf %94, %95 : vector<1x10xf32>
    %c0_5 = arith.constant 0 : index
    %c0_6 = arith.constant 0 : index
    %97 = vector.load %arg2[%c0_5, %c0_6] : memref<1x10xf32, #tpu.memory_space<vmem>>, vector<1x10xf32>
    tpu.vector_store %arg2[%c0_5, %c0_6], %96 {strides = array<i32>} : memref<1x10xf32, #tpu.memory_space<vmem>>, vector<1x10xf32>,
    return
  }
}

</mosaic_0001>

<bundles_post_ra>
// kernel: mlp_forward.1
= control target key start
LH: loop header
LB: loop body
LE: loop exit
PB: predicated region body
PF: predicated region fallthrough
CT: control target
= control target key end

     0   :  { %7 = vsyncpa [#allocation3], 0  ;;  %s346_s0 = inlined_call_operand.hbm [shape: f32[5,10], index: 0, kind: input, shape index: {}]   ;;  %s347_s1 = inlined_call_operand.vmem [shape: f32[22], index: 1, kind: input, shape index: {}]   ;;  %s348_s2 = inlined_call_operand.hbm [shape: f32[1,10], index: 2, kind: output, shape index: {}]  }
   0x1   :  { %8 = vsyncpa [#allocation5], 0 }
   0x2   :  { %9 = vsyncpa [#allocation4], 0  ;;  %s15_s11 = sshll.u32 %s346_s0, 4  ;;  %s293_s12 = smov [#allocation2]   ;;  %s16_s11 = int_to_ptr.hbm [resolvable:$true] %s15_s11 }
   0x3   :  { %s17_s13 = sshll.u32 %s293_s12, 4  ;;  %s26_s16 = sshll.u32 %s347_s1, 4  ;;  %s18_s13 = int_to_ptr.vmem [resolvable:$true] %s17_s13  ;;  %s27_s16 = int_to_ptr.vmem [resolvable:$true] %s26_s16 }
   0x4   :  { %20 = dma.hbm_to_vmem [thread:$0]  %s16_s11, 128, %s18_s13, [#allocation3]  }
   0x5   :  { %s294_s17 = smov [#allocation6]  }
   0x6   :  { %29 = dma.vmem_to_smem %s27_s16, 16, %s294_s17, [#allocation5]  }
   0x7   :  { %287 = dma.done.wait [#allocation3], 128  }
   0x8   :  { %288 = vsyncadd [#allocation3], 4294967168 }
   0x9   :  { %289 = dma.done.wait [#allocation5], 16  }
   0xa   :  { %290 = vsyncadd [#allocation5], 4294967280 }
   0xb   :  { %38 = sfence }
   0xc   :  { %s198_s18 = sld [smem:[#allocation6 + $0xf]]  ;;  %v317_v0 = vld [vmem:[#allocation2] sm:$0x1f]  ;;  %s295_s10 = smov [#allocation7]   ;;  %vm178_vm4 = vcmask 73728  }
   0xd   :  { %s41_s19 = sld [smem:[#allocation6]]  ;;  %s185_s11 = sshll.u32 %s295_s10, 4  ;;  %s186_s11 = int_to_ptr.vmem [resolvable:$true] %s185_s11 }
   0xe   :  { %s199_s0 = sld [smem:[#allocation6 + $0x1]]  ;;  %s187_s14 = sshll.u32 %s348_s2, 4  ;;  %s188_s14 = int_to_ptr.hbm [resolvable:$true] %s187_s14 }
   0xf   :  { %s200_s20 = sld [smem:[#allocation6 + $0x2]] }
  0x10   :  { %s201_s21 = sld [smem:[#allocation6 + $0x3]] }
  0x11   :  { %s202_s22 = sld [smem:[#allocation6 + $0x4]] }
  0x12   :  { %s319_s23 = sld [smem:[#allocation6 + $0x10]]  ;;  %v44_v2 = vstv %s198_s18 }
  0x13   :  { %v42_v1 = vstv %s41_s19  ;;  %s204_s1 = sld [smem:[#allocation6 + $0x5]] }
  0x14   :  { %v43_v3 = vmul.f32 %v42_v1, %v317_v0  ;;  %v47_v4 = vstv %s199_s0  ;;  %s205_s24 = sld [smem:[#allocation6 + $0x6]] }
  0x15   :  { %v48_v5 = vmul.f32 %v47_v4, %v317_v0  ;;  %v54_v6 = vstv %s200_s20  ;;  %s206_s25 = sld [smem:[#allocation6 + $0x7]] }
  0x16   :  { %v45_v7 = vadd.f32 %v44_v2, %v43_v3  ;;  %v55_v8 = vmul.f32 %v54_v6, %v317_v0  ;;  %v61_v9 = vstv %s201_s21  ;;  %s207_s26 = sld [smem:[#allocation6 + $0x8]] }
  0x17   :  { %v50_v10 = vrot.slane %v48_v5, 1  ;;  %v62_v11 = vmul.f32 %v61_v9, %v317_v0  ;;  %v68_v12 = vstv %s202_s22  ;;  %s208_s27 = sld [smem:[#allocation6 + $0x9]] }
  0x18   :  { %v57_v13 = vrot.slane %v55_v8, 2  ;;  %v69_v14 = vmul.f32 %v68_v12, %v317_v0  ;;  %s326_s28 = sld [smem:[#allocation6 + $0x11]]  ;;  %v79_v18 = vstv %s319_s23 }
  0x19   :  { %v52_v15 = vadd.f32 %v50_v10, %v45_v7  ;;  %v64_v16 = vrot.slane %v62_v11, 3  ;;  %v77_v17 = vstv %s204_s1  ;;  %s210_s29 = sld [smem:[#allocation6 + $0xa]] }
  0x1a   :  { %v78_v19 = vmul.f32 %v77_v17, %v317_v0  ;;  %v82_v20 = vstv %s205_s24  ;;  %s211_s30 = sld [smem:[#allocation6 + $0xb]]  ;;  %v71_v22 = vrot.slane %v69_v14, 4 }
  0x1b   :  { %v59_v21 = vadd.f32 %v57_v13, %v52_v15  ;;  %v83_v23 = vmul.f32 %v82_v20, %v317_v0  ;;  %v89_v24 = vstv %s206_s25  ;;  %s212_s3 = sld [smem:[#allocation6 + $0xc]] }
  0x1c   :  { %v80_v25 = vadd.f32 %v79_v18, %v78_v19  ;;  %v90_v26 = vmul.f32 %v89_v24, %v317_v0  ;;  %v96_v27 = vstv %s207_s26  ;;  %s213_s4 = sld [smem:[#allocation6 + $0xd]] }
  0x1d   :  { %v66_v28 = vadd.f32 %v64_v16, %v59_v21  ;;  %v85_v29 = vrot.slane %v83_v23, 1  ;;  %v97_v30 = vmul.f32 %v96_v27, %v317_v0  ;;  %v103_v31 = vstv %s208_s27  ;;  %s214_s5 = sld [smem:[#allocation6 + $0xe]] }
  0x1e   :  { %v92_v32 = vrot.slane %v90_v26, 2  ;;  %v104_v33 = vmul.f32 %v103_v31, %v317_v0  ;;  %v114_v34 = vstv %s326_s28  ;;  %s335_s6 = sld [smem:[#allocation6 + $0x15]] }
  0x1f   :  { %v73_v35 = vadd.f32 %v71_v22, %v66_v28  ;;  %v87_v36 = vadd.f32 %v85_v29, %v80_v25  ;;  %v99_v37 = vrot.slane %v97_v30, 3  ;;  %v112_v38 = vstv %s210_s29  ;;  %s216_s7 = sld [smem:[#allocation6 + $0x12]] }
  0x20   :  { %v113_v39 = vmul.f32 %v112_v38, %v317_v0  ;;  %v117_v40 = vstv %s211_s30  ;;  %s217_s8 = sld [smem:[#allocation6 + $0x13]]  ;;  %v106_v42 = vrot.slane %v104_v33, 4 }
  0x21   :  { %v94_v41 = vadd.f32 %v92_v32, %v87_v36  ;;  %v118_v43 = vmul.f32 %v117_v40, %v317_v0  ;;  %v124_v44 = vstv %s212_s3  ;;  %v74_v45 = vmax.f32 %v73_v35, 0.0  ;;  %s218_s9 = sld [smem:[#allocation6 + $0x14]] }
  0x22   :  { %v115_v46 = vadd.f32 %v114_v34, %v113_v39  ;;  %v125_v47 = vmul.f32 %v124_v44, %v317_v0  ;;  %v131_v48 = vstv %s213_s4 }
  0x23   :  { %v101_v49 = vadd.f32 %v99_v37, %v94_v41  ;;  %v120_v50 = vrot.slane %v118_v43, 1  ;;  %v132_v51 = vmul.f32 %v131_v48, %v317_v0  ;;  %v138_v52 = vstv %s214_s5 }
  0x24   :  { %v127_v53 = vrot.slane %v125_v47, 2  ;;  %v139_v54 = vmul.f32 %v138_v52, %v317_v0  ;;  %v149_v60 = vstv %s335_s6 }
  0x25   :  { %v108_v55 = vadd.f32 %v106_v42, %v101_v49  ;;  %v122_v56 = vadd.f32 %v120_v50, %v115_v46  ;;  %v134_v57 = vrot.slane %v132_v51, 3  ;;  %v147_v58 = vstv %s216_s7 }
  0x26   :  { %v148_v59 = vmul.f32 %v147_v58, %v74_v45  ;;  %v152_v61 = vstv %s217_s8  ;;  %v141_v1 = vrot.slane %v139_v54, 4 }
  0x27   :  { %v109_v62 = vmax.f32 %v108_v55, 0.0  ;;  %v129_v63 = vadd.f32 %v127_v53, %v122_v56  ;;  %v156_v6 = vstv %s218_s9 }
  0x28   :  { %v150_v3 = vadd.f32 %v149_v60, %v148_v59 }
  0x29   :  { %v136_v2 = vadd.f32 %v134_v57, %v129_v63  ;;  %v153_v4 = vmul.f32 %v152_v61, %v109_v62 }
  0x2b   :  { %v143_v5 = vadd.f32 %v141_v1, %v136_v2  ;;  %v154_v8 = vadd.f32 %v153_v4, %v150_v3 }
  0x2d   :  { %v144_v7 = vmax.f32 %v143_v5, 0.0 }
  0x2f   :  { %v157_v9 = vmul.f32 %v156_v6, %v144_v7 }
  0x31   :  { %v158_v0 = vadd.f32 %v157_v9, %v154_v8 }
  0x33   :  { %v219_v10 = vmul.f32 -1.442695, %v158_v0 }
  0x35   :  { %223 = vpow2.f32 %v219_v10 }
  0x3b   :  { %v224_v11 = vpop.eup %223 }
  0x3c   :  { %v162_v12 = vadd.f32 1.0, %v224_v11 }
  0x3e   :  { %225 = vrcp.f32 %v162_v12  ;;  %v174_v15 = vand.u32 2147483648, %v162_v12  ;;  %vm168_vm0 = vweird.f32 %v162_v12  ;;  %v172_v17 = vand.u32 2147483647, %v162_v12 }
  0x40   :  { %v175_v19 = vor.u32 1.1754944e-38, %v174_v15  ;;  %vm173_vm3 = vcmp.eq.f32.partialorder %v172_v17, 8.507059e+37 }
  0x44   :  { %v226_v13 = vpop.eup %225 }
  0x45   :  { %v164_v14 = vmul.f32 %v226_v13, %v162_v12  ;;  %vm169_vm1 = vweird.f32 %v226_v13 }
  0x46   :  { %vm170_vm2 = vmor %vm168_vm0, %vm169_vm1 }
  0x47   :  { %v165_v16 = vsub.f32 1.0, %v164_v14 }
  0x49   :  { %v166_v18 = vmul.f32 %v226_v13, %v165_v16 }
  0x4b   :  { %v167_v20 = vadd.f32 %v226_v13, %v166_v18 }
  0x4d   :  { %v171_v21 = vsel %vm170_vm2, %v226_v13, %v167_v20 }
  0x4e   :  { %v176_v22 = vsel %vm173_vm3, %v175_v19, %v171_v21 }
  0x4f   :  { %179 = vst.msk [vmem:[#allocation7] sm:$0x1] %vm178_vm4, %v176_v22 }
  0x50   :  { %190 = dma.vmem_to_hbm [thread:$0]  %s186_s11, 16, %s188_s14, [#allocation4]  }
  0x51   :  { %291 = dma.done.wait [#allocation4], 16  }
  0x52   :  { %292 = vsyncadd [#allocation4], 4294967280 }
  0x53   :  { %195 = vsyncpa [#allocation3], 1 }
  0x54   :  { %196 = vsyncpa [#allocation4], 1 }
  0x55   :  { %197 = vsyncpa [#allocation5], 1 }

</bundles_post_ra>
